<compile_context>
chip_gen: v7x
topology: tpu7x:2x2x1
jax: 0.10.0
libtpu: 0.0.40
codegen_flags: <defaults>
</compile_context>

<pallas_src>
import jax
import jax.numpy as jnp
from jax.experimental import pallas as pl
from jax.experimental.pallas import tpu as pltpu

WIN = 9  # PyTorch module default: win=None -> [9, 9]


def _pick_bt(batch, height, max_rows=512):
    """Images per grid step.  Prefer >= 2 grid steps (dual-TC on v7x) and
    <= max_rows sublane rows per slab; block rows must be a multiple of 8
    (or the full extent)."""
    divs = [c for c in range(1, batch + 1) if batch % c == 0]
    legal = [c for c in divs if c == batch or (c * height) % 8 == 0]
    pref = [c for c in legal if c * height <= max_rows and batch // c >= 2]
    if pref:
        return max(pref)
    fit = [c for c in legal if c * height <= max_rows]
    if fit:
        return max(fit)
    return min(legal)


def _vmem_limit_bytes(bt, H, W):
    """Footprint-based VMEM request with headroom, capped per generation."""
    bh = bt * H
    f32, bf16 = 4, 2
    inputs = 2 * 2 * bh * W * f32                  # 2 f32 inputs, double-buffered
    scratch = (5 * bh + 16) * W * f32              # staged box-filter slab
    temps = 5 * bh * W * (bf16 + 3 * f32)          # stacked stats + box sums + epilogue
    out = 2 * 8 * 128 * f32
    need = inputs + scratch + temps + out
    limit = 2 * need + (8 << 20)                   # headroom for compiler scratch
    try:
        cap = pltpu.get_tpu_info().vmem_capacity_bytes
    except Exception:
        cap = 64 << 20                             # conservative (v7x per-core VMEM)
    return int(max(min(limit, (cap * 3) // 4), 4 << 20))


def ncc_loss(y_true, y_pred, win=WIN):
    """Pallas TPU implementation of NCC().forward(y_true, y_pred) for 2D inputs."""
    B, C, H, W = y_true.shape
    assert C == 1, "sum_filt has a single input channel, so C must be 1"
    pad = win // 2
    win_size = float(win * win)
    inv_win = 1.0 / win_size

    # Free reshape (no HBM transpose): [B,1,H,W] -> [B*H, W].
    I2d = y_true.astype(jnp.float32).reshape(B * H, W)
    J2d = y_pred.astype(jnp.float32).reshape(B * H, W)

    Bt = _pick_bt(B, H)
    G = B // Bt                 # grid steps (independent partial sums)
    BH = Bt * H                 # rows per grid step
    NR = 5 * BH                 # rows after stacking the five statistics
    PADROWS = max(8, ((pad + 7) // 8) * 8)   # zeroed guard rows in the scratch

    def kernel(i_ref, j_ref, out_ref, scr_ref):
        x = i_ref[...]          # [BH, W] f32
        y = j_ref[...]

        # 9-wide zero-padded box filter along W: one bf16 MXU matmul with a
        # plain band matrix built in-kernel (exact 0/1 entries in bf16).
        ii = jax.lax.broadcasted_iota(jnp.int32, (W, W), 0)
        jj = jax.lax.broadcasted_iota(jnp.int32, (W, W), 1)
        a_w = jnp.where((ii - jj <= pad) & (jj - ii <= pad), 1.0, 0.0)
        a_w = a_w.astype(jnp.bfloat16)

        # Batch the five statistics into ONE weight-stationary MXU pass
        # (stacked along sublanes, bf16 operands, f32 accumulation).
        stats = jnp.concatenate([x, y, x * x, y * y, x * y], axis=0)   # [NR, W] f32
        t = jnp.dot(stats.astype(jnp.bfloat16), a_w,
                    preferred_element_type=jnp.float32)                # [NR, W] f32

        # 9-wide zero-padded box filter along H (sublanes): stage t in VMEM
        # with zeroed guard rows, then accumulate 9 sublane-offset loads with
        # per-image boundary masks.  This runs on load/VPU slots, not the MXU.
        scr_ref[pl.ds(0, PADROWS), :] = jnp.zeros((PADROWS, W), jnp.float32)
        scr_ref[pl.ds(PADROWS + NR, PADROWS), :] = jnp.zeros((PADROWS, W), jnp.float32)
        scr_ref[pl.ds(PADROWS, NR), :] = t

        # Row index within each image (period-H pattern along the NR axis).
        row_img = jax.lax.broadcasted_iota(jnp.int32, (H, W), 0)
        row = jnp.concatenate([row_img] * (5 * Bt), axis=0)           # [NR, W] i32

        box = t                                                       # d = 0 term
        for d in range(1, pad + 1):
            dn = scr_ref[pl.ds(PADROWS + d, NR), :]                   # rows r + d
            up = scr_ref[pl.ds(PADROWS - d, NR), :]                   # rows r - d
            box = box + jnp.where(row < H - d, dn, 0.0)
            box = box + jnp.where(row >= d, up, 0.0)

        # Epilogue: consume each box sum immediately; exact identities
        # (u * win_size == sum) keep the live-slab count low.
        i_sum = box[0 * BH:1 * BH]
        j_sum = box[1 * BH:2 * BH]
        u_i = i_sum * inv_win
        u_j = j_sum * inv_win
        i_var = box[2 * BH:3 * BH] - u_i * i_sum   # == I2_sum - 2 uI I_sum + uI^2 win
        j_var = box[3 * BH:4 * BH] - u_j * j_sum
        cross = box[4 * BH:5 * BH] - u_j * i_sum   # == IJ_sum - uJ I_sum - uI J_sum + uI uJ win
        cc = (cross * cross) * pl.reciprocal(i_var * j_var + 1e-5, approx=True)

        # Lane-dense per-step partial sum (no iota/where masking).
        out_ref[...] = jnp.full((1, 8, 128), jnp.sum(cc), jnp.float32)

    partials = pl.pallas_call(
        kernel,
        out_shape=jax.ShapeDtypeStruct((G, 8, 128), jnp.float32),
        grid=(G,),
        in_specs=[
            pl.BlockSpec((BH, W), lambda g: (g, 0)),
            pl.BlockSpec((BH, W), lambda g: (g, 0)),
        ],
        out_specs=pl.BlockSpec((1, 8, 128), lambda g: (g, 0, 0)),
        scratch_shapes=[pltpu.VMEM((NR + 2 * PADROWS, W), jnp.float32)],
        compiler_params=pltpu.CompilerParams(
            dimension_semantics=("parallel",),
            vmem_limit_bytes=_vmem_limit_bytes(Bt, H, W)),
    )(I2d, J2d)

    total = jnp.sum(partials[:, 0, 0])
    # -mean(cc) over the full [B, 1, H, W] cc map.
    return -(total / (B * C * H * W))


def ncc_ref(y_true, y_pred, win=WIN):
    """Pure-JAX f32 reference mirroring the PyTorch forward (for verification)."""
    I = y_true.astype(jnp.float32)
    J = y_pred.astype(jnp.float32)
    pad = win // 2
    filt = jnp.ones((1, 1, win, win), jnp.float32)

    def conv(x):
        return jax.lax.conv_general_dilated(
            x, filt, window_strides=(1, 1),
            padding=[(pad, pad), (pad, pad)],
            dimension_numbers=("NCHW", "OIHW", "NCHW"),
            precision=jax.lax.Precision.HIGHEST)

    I2, J2, IJ = I * I, J * J, I * J
    I_sum, J_sum = conv(I), conv(J)
    I2_sum, J2_sum, IJ_sum = conv(I2), conv(J2), conv(IJ)
    win_size = float(win * win)
    u_I = I_sum / win_size
    u_J = J_sum / win_size
    cross = IJ_sum - u_J * I_sum - u_I * J_sum + u_I * u_J * win_size
    I_var = I2_sum - 2.0 * u_I * I_sum + u_I * u_I * win_size
    J_var = J2_sum - 2.0 * u_J * J_sum + u_J * u_J * win_size
    cc = cross * cross / (I_var * J_var + 1e-5)
    return -jnp.mean(cc)


if __name__ == "__main__":
    key = jax.random.PRNGKey(0)
    k1, k2 = jax.random.split(key)
    B, C, H, W = 2, 1, 16, 16
    y_true = jax.random.normal(k1, (B, C, H, W), dtype=jnp.float32)
    y_pred = jax.random.normal(k2, (B, C, H, W), dtype=jnp.float32)

    out = jax.block_until_ready(ncc_loss(y_true, y_pred))
    ref = jax.block_until_ready(ncc_ref(y_true, y_pred))

    # Tolerance reflects the deliberate bf16 MXU operands and the EUP
    # approximate reciprocal (both blessed trade-offs for a loss value).
    assert jnp.allclose(out, ref, rtol=1e-2, atol=1e-4), (out, ref)
    print("KERNEL_OK")
</pallas_src>

<mosaic_0001>
module attributes {stable_mosaic.version = 11 : i64} {
  func.func @kernel(%arg0: i32, %arg1: memref<16x16xf32, #tpu.memory_space<vmem>>, %arg2: memref<16x16xf32, #tpu.memory_space<vmem>>, %arg3: memref<1x8x128xf32, #tpu.memory_space<vmem>>, %arg4: memref<96x16xf32, #tpu.memory_space<vmem>>) attributes {dimension_semantics = [#tpu.dimension_semantics<parallel>], iteration_bounds = array<i64: 2>, scalar_prefetch = 0 : i64, scratch_operands = 1 : i64, tpu.core_type = #tpu.core_type<tc>, window_params = [{transform_indices = @transform_0, window_bounds = array<i64: 16, 16>}, {transform_indices = @transform_1, window_bounds = array<i64: 16, 16>}, {transform_indices = @transform_2, window_bounds = array<i64: 1, 8, 128>}]} {
    %c0 = arith.constant 0 : index
    %c0_0 = arith.constant 0 : index
    %0 = vector.load %arg1[%c0, %c0_0] : memref<16x16xf32, #tpu.memory_space<vmem>>, vector<16x16xf32>
    %c0_1 = arith.constant 0 : index
    %c0_2 = arith.constant 0 : index
    %1 = vector.load %arg2[%c0_1, %c0_2] : memref<16x16xf32, #tpu.memory_space<vmem>>, vector<16x16xf32>
    %2 = tpu.iota {dimensions = array<i32: 0>} : vector<16x16xi32>
    %3 = tpu.iota {dimensions = array<i32: 1>} : vector<16x16xi32>
    %4 = arith.subi %2, %3 : vector<16x16xi32>
    %c4_i32 = arith.constant 4 : i32
    %5 = vector.broadcast %c4_i32 : i32 to vector<16x16xi32>
    %6 = arith.cmpi sle, %4, %5 : vector<16x16xi32>
    %7 = arith.subi %3, %2 : vector<16x16xi32>
    %c4_i32_3 = arith.constant 4 : i32
    %8 = vector.broadcast %c4_i32_3 : i32 to vector<16x16xi32>
    %9 = arith.cmpi sle, %7, %8 : vector<16x16xi32>
    %10 = arith.andi %6, %9 : vector<16x16xi1>
    %cst = arith.constant 1.000000e+00 : f32
    %cst_4 = arith.constant 0.000000e+00 : f32
    %11 = vector.broadcast %cst : f32 to vector<16x16xf32>
    %12 = vector.broadcast %cst_4 : f32 to vector<16x16xf32>
    %13 = arith.select %10, %11, %12 : vector<16x16xi1>, vector<16x16xf32>
    %14 = arith.truncf %13 : vector<16x16xf32> to vector<16x16xbf16>
    %15 = arith.mulf %0, %0 : vector<16x16xf32>
    %16 = arith.mulf %1, %1 : vector<16x16xf32>
    %17 = arith.mulf %0, %1 : vector<16x16xf32>
    %18 = tpu.concatenate %0, %1, %15, %16, %17 in 0 : vector<16x16xf32>, vector<16x16xf32>, vector<16x16xf32>, vector<16x16xf32>, vector<16x16xf32> -> vector<80x16xf32>
    %19 = arith.truncf %18 : vector<80x16xf32> to vector<80x16xbf16>
    %cst_5 = arith.constant dense<0.000000e+00> : vector<80x16xf32>
    %20 = tpu.matmul %19, %14, %cst_5 {dimension_numbers = #tpu.dot_dimension_numbers<[1], [0], [0], [1], [0, 0, 1, 1], [], []>} : vector<80x16xbf16>, vector<16x16xbf16>, vector<80x16xf32> -> vector<80x16xf32>
    %cst_6 = arith.constant 0.000000e+00 : f32
    %21 = vector.broadcast %cst_6 : f32 to vector<8x16xf32>
    %c0_7 = arith.constant 0 : index
    %c0_8 = arith.constant 0 : index
    %22 = vector.load %arg4[%c0_7, %c0_8] : memref<96x16xf32, #tpu.memory_space<vmem>>, vector<8x16xf32>
    tpu.vector_store %arg4[%c0_7, %c0_8], %21 {strides = array<i32>} : memref<96x16xf32, #tpu.memory_space<vmem>>, vector<8x16xf32>,
    %cst_9 = arith.constant 0.000000e+00 : f32
    %23 = vector.broadcast %cst_9 : f32 to vector<8x16xf32>
    %c88 = arith.constant 88 : index
    %c0_10 = arith.constant 0 : index
    %24 = vector.load %arg4[%c88, %c0_10] : memref<96x16xf32, #tpu.memory_space<vmem>>, vector<8x16xf32>
    tpu.vector_store %arg4[%c88, %c0_10], %23 {strides = array<i32>} : memref<96x16xf32, #tpu.memory_space<vmem>>, vector<8x16xf32>,
    %c8 = arith.constant 8 : index
    %c0_11 = arith.constant 0 : index
    %25 = vector.load %arg4[%c8, %c0_11] : memref<96x16xf32, #tpu.memory_space<vmem>>, vector<80x16xf32>
    tpu.vector_store %arg4[%c8, %c0_11], %20 {strides = array<i32>} : memref<96x16xf32, #tpu.memory_space<vmem>>, vector<80x16xf32>,
    %26 = tpu.iota {dimensions = array<i32: 0>} : vector<16x16xi32>
    %27 = tpu.concatenate %26, %26, %26, %26, %26 in 0 : vector<16x16xi32>, vector<16x16xi32>, vector<16x16xi32>, vector<16x16xi32>, vector<16x16xi32> -> vector<80x16xi32>
    %c9 = arith.constant 9 : index
    %c0_12 = arith.constant 0 : index
    %28 = vector.load %arg4[%c9, %c0_12] : memref<96x16xf32, #tpu.memory_space<vmem>>, vector<80x16xf32>
    %c7 = arith.constant 7 : index
    %c0_13 = arith.constant 0 : index
    %29 = vector.load %arg4[%c7, %c0_13] : memref<96x16xf32, #tpu.memory_space<vmem>>, vector<80x16xf32>
    %c15_i32 = arith.constant 15 : i32
    %30 = vector.broadcast %c15_i32 : i32 to vector<80x16xi32>
    %31 = arith.cmpi slt, %27, %30 : vector<80x16xi32>
    %cst_14 = arith.constant 0.000000e+00 : f32
    %32 = vector.broadcast %cst_14 : f32 to vector<80x16xf32>
    %33 = arith.select %31, %28, %32 : vector<80x16xi1>, vector<80x16xf32>
    %34 = arith.addf %20, %33 : vector<80x16xf32>
    %c1_i32 = arith.constant 1 : i32
    %35 = vector.broadcast %c1_i32 : i32 to vector<80x16xi32>
    %36 = arith.cmpi sge, %27, %35 : vector<80x16xi32>
    %cst_15 = arith.constant 0.000000e+00 : f32
    %37 = vector.broadcast %cst_15 : f32 to vector<80x16xf32>
    %38 = arith.select %36, %29, %37 : vector<80x16xi1>, vector<80x16xf32>
    %39 = arith.addf %34, %38 : vector<80x16xf32>
    %c10 = arith.constant 10 : index
    %c0_16 = arith.constant 0 : index
    %40 = vector.load %arg4[%c10, %c0_16] : memref<96x16xf32, #tpu.memory_space<vmem>>, vector<80x16xf32>
    %c6 = arith.constant 6 : index
    %c0_17 = arith.constant 0 : index
    %41 = vector.load %arg4[%c6, %c0_17] : memref<96x16xf32, #tpu.memory_space<vmem>>, vector<80x16xf32>
    %c14_i32 = arith.constant 14 : i32
    %42 = vector.broadcast %c14_i32 : i32 to vector<80x16xi32>
    %43 = arith.cmpi slt, %27, %42 : vector<80x16xi32>
    %cst_18 = arith.constant 0.000000e+00 : f32
    %44 = vector.broadcast %cst_18 : f32 to vector<80x16xf32>
    %45 = arith.select %43, %40, %44 : vector<80x16xi1>, vector<80x16xf32>
    %46 = arith.addf %39, %45 : vector<80x16xf32>
    %c2_i32 = arith.constant 2 : i32
    %47 = vector.broadcast %c2_i32 : i32 to vector<80x16xi32>
    %48 = arith.cmpi sge, %27, %47 : vector<80x16xi32>
    %cst_19 = arith.constant 0.000000e+00 : f32
    %49 = vector.broadcast %cst_19 : f32 to vector<80x16xf32>
    %50 = arith.select %48, %41, %49 : vector<80x16xi1>, vector<80x16xf32>
    %51 = arith.addf %46, %50 : vector<80x16xf32>
    %c11 = arith.constant 11 : index
    %c0_20 = arith.constant 0 : index
    %52 = vector.load %arg4[%c11, %c0_20] : memref<96x16xf32, #tpu.memory_space<vmem>>, vector<80x16xf32>
    %c5 = arith.constant 5 : index
    %c0_21 = arith.constant 0 : index
    %53 = vector.load %arg4[%c5, %c0_21] : memref<96x16xf32, #tpu.memory_space<vmem>>, vector<80x16xf32>
    %c13_i32 = arith.constant 13 : i32
    %54 = vector.broadcast %c13_i32 : i32 to vector<80x16xi32>
    %55 = arith.cmpi slt, %27, %54 : vector<80x16xi32>
    %cst_22 = arith.constant 0.000000e+00 : f32
    %56 = vector.broadcast %cst_22 : f32 to vector<80x16xf32>
    %57 = arith.select %55, %52, %56 : vector<80x16xi1>, vector<80x16xf32>
    %58 = arith.addf %51, %57 : vector<80x16xf32>
    %c3_i32 = arith.constant 3 : i32
    %59 = vector.broadcast %c3_i32 : i32 to vector<80x16xi32>
    %60 = arith.cmpi sge, %27, %59 : vector<80x16xi32>
    %cst_23 = arith.constant 0.000000e+00 : f32
    %61 = vector.broadcast %cst_23 : f32 to vector<80x16xf32>
    %62 = arith.select %60, %53, %61 : vector<80x16xi1>, vector<80x16xf32>
    %63 = arith.addf %58, %62 : vector<80x16xf32>
    %c12 = arith.constant 12 : index
    %c0_24 = arith.constant 0 : index
    %64 = vector.load %arg4[%c12, %c0_24] : memref<96x16xf32, #tpu.memory_space<vmem>>, vector<80x16xf32>
    %c4 = arith.constant 4 : index
    %c0_25 = arith.constant 0 : index
    %65 = vector.load %arg4[%c4, %c0_25] : memref<96x16xf32, #tpu.memory_space<vmem>>, vector<80x16xf32>
    %c12_i32 = arith.constant 12 : i32
    %66 = vector.broadcast %c12_i32 : i32 to vector<80x16xi32>
    %67 = arith.cmpi slt, %27, %66 : vector<80x16xi32>
    %cst_26 = arith.constant 0.000000e+00 : f32
    %68 = vector.broadcast %cst_26 : f32 to vector<80x16xf32>
    %69 = arith.select %67, %64, %68 : vector<80x16xi1>, vector<80x16xf32>
    %70 = arith.addf %63, %69 : vector<80x16xf32>
    %c4_i32_27 = arith.constant 4 : i32
    %71 = vector.broadcast %c4_i32_27 : i32 to vector<80x16xi32>
    %72 = arith.cmpi sge, %27, %71 : vector<80x16xi32>
    %cst_28 = arith.constant 0.000000e+00 : f32
    %73 = vector.broadcast %cst_28 : f32 to vector<80x16xf32>
    %74 = arith.select %72, %65, %73 : vector<80x16xi1>, vector<80x16xf32>
    %75 = arith.addf %70, %74 : vector<80x16xf32>
    %76 = vector.extract_strided_slice %75 {offsets = [0, 0], sizes = [16, 16], strides = [1, 1]} : vector<80x16xf32> to vector<16x16xf32>
    %77 = vector.extract_strided_slice %75 {offsets = [16, 0], sizes = [16, 16], strides = [1, 1]} : vector<80x16xf32> to vector<16x16xf32>
    %cst_29 = arith.constant 0.0123456791 : f32
    %78 = vector.broadcast %cst_29 : f32 to vector<16x16xf32>
    %79 = arith.mulf %76, %78 : vector<16x16xf32>
    %cst_30 = arith.constant 0.0123456791 : f32
    %80 = vector.broadcast %cst_30 : f32 to vector<16x16xf32>
    %81 = arith.mulf %77, %80 : vector<16x16xf32>
    %82 = vector.extract_strided_slice %75 {offsets = [32, 0], sizes = [16, 16], strides = [1, 1]} : vector<80x16xf32> to vector<16x16xf32>
    %83 = arith.mulf %79, %76 : vector<16x16xf32>
    %84 = arith.subf %82, %83 : vector<16x16xf32>
    %85 = vector.extract_strided_slice %75 {offsets = [48, 0], sizes = [16, 16], strides = [1, 1]} : vector<80x16xf32> to vector<16x16xf32>
    %86 = arith.mulf %81, %77 : vector<16x16xf32>
    %87 = arith.subf %85, %86 : vector<16x16xf32>
    %88 = vector.extract_strided_slice %75 {offsets = [64, 0], sizes = [16, 16], strides = [1, 1]} : vector<80x16xf32> to vector<16x16xf32>
    %89 = arith.mulf %81, %76 : vector<16x16xf32>
    %90 = arith.subf %88, %89 : vector<16x16xf32>
    %91 = arith.mulf %90, %90 : vector<16x16xf32>
    %92 = arith.mulf %84, %87 : vector<16x16xf32>
    %cst_31 = arith.constant 9.99999974E-6 : f32
    %93 = vector.broadcast %cst_31 : f32 to vector<16x16xf32>
    %94 = arith.addf %92, %93 : vector<16x16xf32>
    %95 = tpu.reciprocal %94 {approx = true} : vector<16x16xf32> -> vector<16x16xf32>
    %96 = arith.mulf %91, %95 : vector<16x16xf32>
    %97 = vector.shape_cast %96 : vector<16x16xf32> to vector<1x16x16xf32>
    %cst_32 = arith.constant dense<0.000000e+00> : vector<1xf32>
    %98 = vector.multi_reduction <add>, %97, %cst_32 [1, 2] : vector<1x16x16xf32> to vector<1xf32>
    %99 = vector.shape_cast %98 : vector<1xf32> to vector<1x1x1xf32>
    %100 = vector.extract %99[0, 0, 0] : f32 from vector<1x1x1xf32>
    %101 = vector.broadcast %100 : f32 to vector<1x8x128xf32>
    %c0_33 = arith.constant 0 : index
    %c0_34 = arith.constant 0 : index
    %c0_35 = arith.constant 0 : index
    %102 = vector.load %arg3[%c0_33, %c0_34, %c0_35] : memref<1x8x128xf32, #tpu.memory_space<vmem>>, vector<1x8x128xf32>
    tpu.vector_store %arg3[%c0_33, %c0_34, %c0_35], %101 {strides = array<i32>} : memref<1x8x128xf32, #tpu.memory_space<vmem>>, vector<1x8x128xf32>,
    return
  }
  func.func @transform_0(%arg0: i32) -> (i32, i32) {
    %c0_i32 = arith.constant 0 : i32
    %c0_i32_0 = arith.constant 0 : i32
    return %arg0, %c0_i32 : i32, i32
  }
  func.func @transform_1(%arg0: i32) -> (i32, i32) {
    %c0_i32 = arith.constant 0 : i32
    %c0_i32_0 = arith.constant 0 : i32
    return %arg0, %c0_i32 : i32, i32
  }
  func.func @transform_2(%arg0: i32) -> (i32, i32, i32) {
    %c0_i32 = arith.constant 0 : i32
    %c0_i32_0 = arith.constant 0 : i32
    %c0_i32_1 = arith.constant 0 : i32
    return %arg0, %c0_i32, %c0_i32_0 : i32, i32, i32
  }
}

</mosaic_0001>

<bundles_post_ra>
// kernel: tpu_custom_call.1
= control target key start
LH: loop header
LB: loop body
LE: loop exit
PB: predicated region body
PF: predicated region fallthrough
CT: control target
= control target key end

     0   :  { %7 = vsyncpa [#allocation4], 0  ;;  %s1123_s0 = inlined_call_operand.vmem [shape: f32[32,16], index: 0, kind: input, shape index: {}]   ;;  %s1124_s1 = inlined_call_operand.vmem [shape: f32[32,16], index: 1, kind: input, shape index: {}]   ;;  %s1125_s2 = inlined_call_operand.hbm [shape: f32[2,8,128], index: 2, kind: output, shape index: {}]  }
   0x1   :  { %9 = vsyncpa [#allocation4 + $0x1], 0  ;;  %s854_s9 = smov 0   ;;  %s856_s10 = smov 0  }
   0x2   :  { %s858_s11 = smov 0   ;;  %s860_s12 = smov 0  }
   0x3 LB: > { %s875_s13 = sadd.s32 4294967295, %s833_s12   ;;  %s673_s14 = sadd.s32 4294967294, %s833_s12   ;;  %s833_s12 = sphi %s860_s12, %s1133_s12   ;;  %s829_s11 = sphi %s858_s11, %s1132_s11   ;;  %s825_s10 = sphi %s856_s10, %s1131_s10   ;;  %s821_s9 = sphi %s854_s9, %s1130_s9  }
   0x4   : > { %s879_s15 = sadd.s32 1, %s833_s12   ;;  %s74_s16 = sadd.s32 1, %s829_s11 }
   0x5   : > { %s71_s17 = ssub.s32 %s833_s12, %s879_s15  ;;  %p84_p0 = scmp.ne.s32.totalorder %s829_s11, %s825_s10 }
   0x6   : > { %p72_p1 = scmp.eq.s32.totalorder %s71_s17, 0  ;;  %p85_p2 = scmp.eq.s32.totalorder %s875_s13, 1 }
   0x7   : > { %p90_p3 = scmp.ne.s32.totalorder %s825_s10, %s821_s9  ;;  %p91_p4 = scmp.eq.s32.totalorder %s673_s14, 1 }
   0x8   : > { %s890_s18 = scalar_select %p72_p1, %s829_s11, %s74_s16  }
   0x9   : > { %p892_p5 = por %p85_p2, %p84_p0  ;;  %p896_p6 = por %p91_p4, %p90_p3 }
   0xa   : > { %p676_p7 = scmp.ge.s32.totalorder %s833_s12, 1  ;;  %p127_p8 = scmp.lt.s32.totalorder %s833_s12, 3 }
   0xc   : > { %p128_p9 = pnand %p676_p7, %p127_p8 }
   0xd   : > { %vm200_vm0 = vcmask (!%p128_p9), 130048   ;;  %v171_v0 = vlaneseq (!%p128_p9)  ;;  %s678_s21 = sshll.u32 (!%p128_p9), %s875_s13, 1  ;;  %v835_v1 = vmov (!%p128_p9), 0.0   ;;  %vm836_vm1 = vmmov (!%p128_p9), 0   ;;  %s151_s29 = sand.u32 (!%p128_p9), 1, %s825_s10  }
   0xe   : > { %131 = sbr.rel (%p128_p9) target bundleno = 530 (0x212), region = 28  ;;  %699 = vmatprep.subr.bf16.mxu0 (!%p128_p9), %v835_v1  ;;  %289 = vst.msk [vmem:[#allocation2] sm:$0xff] (!%p128_p9), %vm200_vm0, %v835_v1  ;;  %290 = vst.msk [vmem:[#allocation2 + $0x58] sm:$0xff] (!%p128_p9), %vm200_vm0, %v835_v1  ;;  %721 = vmatprep.subr.bf16.mxu1 (!%p128_p9), %v835_v1  ;;  %p155_p10 = scmp.lt.s32.totalorder (!%p128_p9), %s678_s21, 3  ;;  %v837_v17 = vmov (!%p128_p9), 1.0|1.0  }
   0xf   : > { %v905_v2 = vshrl.u32 (!%p128_p9), %v171_v0, 7  ;;  %v175_v3 = vand.u32 (!%p128_p9), 127, %v171_v0  ;;  %701 = vmatprep.mubr.msk.bf16.mxu0 (!%p128_p9), %vm836_vm1, %v835_v1  ;;  %713 = vmatprep.mubr.msk.bf16.mxu1 (!%p128_p9), %vm836_vm1, %v835_v1  ;;  %s677_s30 = sshll.u32 (!%p128_p9), %s151_s29, 3  ;;  %s690_s5 = sshll.u32 (!%p128_p9), %s875_s13, 7 }
  0x10   : > { %s153_s3 = scalar_lea.vmem (!%p128_p9), [#allocation3], %s677_s30  ;;  %s1083_s14 = scalar_lea.hbm (!%p128_p9), %s1125_s2, %s690_s5 }
  0x11   : > { %v910_v4 = vadd.s32 (!%p128_p9), 8, %v905_v2  ;;  %v176_v5 = vsub.s32 (!%p128_p9), %v905_v2, %v175_v3  ;;  %v180_v6 = vsub.s32 (!%p128_p9), %v175_v3, %v905_v2  ;;  %vm343_vm9 = vcmp.ge.s32.totalorder (!%p128_p9), %v905_v2, 1  ;;  %s602_s4 = sshll.u32 (!%p128_p9), %s153_s3, 4  ;;  %s589_s16 = scalar_lea.sflag (!%p128_p9), [#allocation4], %s151_s29  ;;  %s1078_s4 = int_to_ptr.vmem [resolvable:$true] %s602_s4 }
  0x12   : > { %vm407_vm10 = vcmp.ge.s32.totalorder (!%p128_p9), %v905_v2, 2  ;;  %vm471_vm13 = vcmp.ge.s32.totalorder (!%p128_p9), %v905_v2, 3  ;;  %s771_s17 = scalar_lea.vmem (!%p128_p9), %s1078_s4, 128  ;;  %s838_s13 = smov (!%p128_p9), [#allocation3]  }
  0x13   : > { %v177_v7 = vsub.s32 (!%p128_p9), %v910_v4, %v175_v3  ;;  %vm915_vm2 = vcmp.le.s32.totalorder (!%p128_p9), %v176_v5, 4  ;;  %v181_v9 = vsub.s32 (!%p128_p9), %v175_v3, %v910_v4  ;;  %vm182_vm3 = vcmp.le.s32.totalorder (!%p128_p9), %v180_v6, 4  ;;  %p772_p11 = scmp.ne.s32.totalorder (!%p128_p9), %s1078_s4, %s771_s17 }
  0x14   : > { %vm184_vm4 = vmand (!%p128_p9), %vm915_vm2, %vm182_vm3  ;;  %vm322_vm11 = vcmp.lt.s32.totalorder (!%p128_p9), %v910_v4, 15  ;;  %vm386_vm12 = vcmp.lt.s32.totalorder (!%p128_p9), %v910_v4, 14  ;;  %vm450_vm14 = vcmp.lt.s32.totalorder (!%p128_p9), %v910_v4, 13  ;;  %vm505_vm15 = vcmp.lt.s32.totalorder (!%p128_p9), %v910_v4, 12 }
  0x15   : > { %s1135_s21 = smov (!%p155_p10, %s678_s21), 3  ;;  %vm179_vm5 = vcmp.le.s32.totalorder %v177_v7, 4  ;;  %vm183_vm6 = vcmp.le.s32.totalorder %v181_v9, 4  ;;  %p773_p12 = pnand %p772_p11, %p892_p5 }
  0x16   : > { %s679_s22 = sshll.u32 %s1135_s21, 3  ;;  %vm185_vm7 = vmand %vm179_vm5, %vm183_vm6  ;;  %s775_s21 = sshll.u32 %s838_s13, 4  ;;  %s776_s21 = int_to_ptr.vmem [resolvable:$false] %s775_s21 }
  0x17   : > { %s158_s25 = scalar_lea.vmem %s1123_s0, %s679_s22  ;;  %s164_s28 = scalar_lea.vmem %s1124_s1, %s679_s22  ;;  %vm682_vm8 = vmpackc.low %vm185_vm7, %vm184_vm4 }
  0x18   : > { %v167_v10 = vld [vmem:[%s158_s25] sm:$0xff]  ;;  %v168_v11 = vld [vmem:[%s158_s25 + $0x8] sm:$0xff]  ;;  %700 = vmatpush3.bf16.msk.msra.mxu0 %vm682_vm8, %v837_v17  ;;  %722 = vmatpush3.bf16.msk.msra.mxu1 %vm682_vm8, %v837_v17  ;;  %p774_p13 = pneg %p773_p12  ;;  %s777_s22 = scalar_lea.vmem %s776_s21, 256 }
  0x19   : > { %v169_v12 = vld [vmem:[%s164_s28] sm:$0xff]  ;;  %v170_v13 = vld [vmem:[%s164_s28 + $0x8] sm:$0xff]  ;;  %v195_v16 = vpack.c.bf16 %v168_v11, %v167_v10  ;;  %v189_v23 = vmul.f32 %v167_v10, %v167_v10  ;;  %v190_v24 = vmul.f32 %v168_v11, %v168_v11  ;;  %p778_p0 = scmp.lt.s32.totalorder %s1078_s4, %s776_s21  ;;  %p779_p1 = scmp.lt.s32.totalorder %s777_s22, %s771_s17 }
  0x1a   : > { %v191_v14 = vmul.f32 %v169_v12, %v169_v12  ;;  %v192_v15 = vmul.f32 %v170_v13, %v170_v13  ;;  %v193_v19 = vmul.f32 %v169_v12, %v167_v10  ;;  %v194_v20 = vmul.f32 %v170_v13, %v168_v11 }
  0x1b   : > { %702 = vmatmul.mubr.msk.bf16.vlgmr.msra.gmra.mrb[0].mxu0 %vm200_vm0, %v195_v16  ;;  %v196_v21 = vpack.c.bf16 %v170_v13, %v169_v12  ;;  %v197_v25 = vpack.c.bf16 %v190_v24, %v189_v23  ;;  %p780_p2 = por %p779_p1, %p778_p0 }
  0x1c   : > { %v198_v18 = vpack.c.bf16 %v192_v15, %v191_v14  ;;  %705 = vmatprep.mubr.msk.bf16.mxu0 %vm836_vm1, %v835_v1  ;;  %v199_v22 = vpack.c.bf16 %v194_v20, %v193_v19 }
  0x1d   : > { %p781_p3 = pnand %p780_p2, %p774_p13 }
  0x1e   : > { %714 = vmatmul.mubr.msk.bf16.vlgmr.msra.gmra.mrb[0].mxu1 %vm200_vm0, %v198_v18 }
  0x1f   : > { %717 = vmatprep.mubr.msk.bf16.mxu1 %vm836_vm1, %v835_v1 }
  0x23   : > { %706 = vmatmul.mubr.msk.bf16.gmra.mrb[4].mxu0 %vm200_vm0, %v196_v21 }
  0x24   : > { %709 = vmatprep.mubr.msk.bf16.mxu0 %vm836_vm1, %v835_v1  ;;  %vm526_vm1 = vcmp.ge.s32.totalorder %v905_v2, 4 }
  0x26   : > { %718 = vmatmul.mubr.msk.bf16.gmra.mrb[4].mxu1 %vm200_vm0, %v199_v22 }
  0x2b   : > { %710 = vmatmul.mubr.msk.bf16.gmra.mrb[8].mxu0 %vm200_vm0, %v197_v25 }
  0xee   : > { %v250_v26 = vpop.f32.mrb[0].mxu0 }
  0xef   : > { %291 = vst.msk [vmem:[#allocation2 + $0x8] sm:$0xff] %vm200_vm0, %v250_v26  ;;  %v703_v28 = vpop.f32.mrb[1].mxu0 }
  0xf0   : > { %v253_v30 = vpop.f32.mrb[2].mxu0 }
  0xf1   : > { %v936_v27 = vpop.f32.mrb[0].mxu1  ;;  %292 = vst.msk [vmem:[#allocation2 + $0x10] sm:$0xff] %vm200_vm0, %v253_v30  ;;  %v704_v32 = vpop.f32.mrb[3].mxu0 }
  0xf2   : > { %297 = vst.msk [vmem:[#allocation2 + $0x38] sm:$0xff] %vm200_vm0, %v936_v27  ;;  %v715_v29 = vpop.f32.mrb[1].mxu1 }
  0xf3   : > { %v277_v31 = vpop.f32.mrb[2].mxu1 }
  0xf4   : > { %298 = vst.msk [vmem:[#allocation2 + $0x40] sm:$0xff] %vm200_vm0, %v277_v31  ;;  %v716_v33 = vpop.f32.mrb[3].mxu1 }
  0xf6   : > { %v943_v34 = vpop.f32.mrb[4].mxu0  ;;  %v311_v38 = vld [vmem:[#allocation2 + $0x7] sm:$0xff] }
  0xf7   : > { %293 = vst.msk [vmem:[#allocation2 + $0x18] sm:$0xff] %vm200_vm0, %v943_v34  ;;  %v707_v36 = vpop.f32.mrb[5].mxu0  ;;  %v345_v45 = vsel %vm343_vm9, %v311_v38, 0.0  ;;  %v375_v47 = vld [vmem:[#allocation2 + $0x6] sm:$0xff] }
  0xf8   : > { %v952_v39 = vpop.f32.mrb[6].mxu0  ;;  %v301_v41 = vld [vmem:[#allocation2 + $0x9] sm:$0xff]  ;;  %v409_v56 = vsel %vm407_vm10, %v375_v47, 0.0 }
  0xf9   : > { %v945_v35 = vpop.f32.mrb[4].mxu1  ;;  %294 = vst.msk [vmem:[#allocation2 + $0x20] sm:$0xff] %vm200_vm0, %v952_v39  ;;  %v708_v42 = vpop.f32.mrb[7].mxu0  ;;  %v333_v44 = vadd.f32 %v301_v41, %v250_v26  ;;  %v365_v48 = vld [vmem:[#allocation2 + $0xa] sm:$0xff] }
  0xfa   : > { %299 = vst.msk [vmem:[#allocation2 + $0x48] sm:$0xff] %vm200_vm0, %v945_v35  ;;  %v719_v37 = vpop.f32.mrb[5].mxu1  ;;  %v439_v51 = vld [vmem:[#allocation2 + $0x5] sm:$0xff]  ;;  %v312_v57 = vld [vmem:[#allocation2 + $0xf] sm:$0xff] }
  0xfb   : > { %v285_v40 = vpop.f32.mrb[6].mxu1  ;;  %v355_v46 = vadd.f32 %v345_v45, %v333_v44  ;;  %v307_v49 = vld [vmem:[#allocation2 + $0x39] sm:$0xff]  ;;  %v429_v9 = vld [vmem:[#allocation2 + $0xb] sm:$0xff]  ;;  %v473_v10 = vsel %vm471_vm13, %v439_v51, 0.0 }
  0xfc   : > { %300 = vst.msk [vmem:[#allocation2 + $0x50] sm:$0xff] %vm200_vm0, %v285_v40  ;;  %v720_v43 = vpop.f32.mrb[7].mxu1  ;;  %v318_v58 = vld [vmem:[#allocation2 + $0x3f] sm:$0xff]  ;;  %v987_v17 = vadd.f32 %v307_v49, %v936_v27  ;;  %v376_v29 = vld [vmem:[#allocation2 + $0xe] sm:$0xff] }
  0xfd   : > { %v397_v50 = vadd.f32 %v365_v48, %v355_v46  ;;  %v382_v37 = vld [vmem:[#allocation2 + $0x3e] sm:$0xff] }
  0xfe   : > { %v302_v52 = vld [vmem:[#allocation2 + $0x11] sm:$0xff]  ;;  %v964_v55 = vpop.f32.mrb[8].mxu0 }
  0xff   : > { %v366_v54 = vld [vmem:[#allocation2 + $0x12] sm:$0xff]  ;;  %v324_v59 = vsel %vm322_vm11, %v302_v52, 0.0  ;;  %295 = vst.msk [vmem:[#allocation2 + $0x28] sm:$0xff] %vm200_vm0, %v964_v55  ;;  %v711_v62 = vpop.f32.mrb[9].mxu0  ;;  %v419_v0 = vadd.f32 %v409_v56, %v397_v50 }
 0x100   : > { %v313_v63 = vld [vmem:[#allocation2 + $0x17] sm:$0xff]  ;;  %v334_v3 = vadd.f32 %v324_v59, %v253_v30  ;;  %v388_v7 = vsel %vm386_vm12, %v366_v54, 0.0  ;;  %v976_v8 = vpop.f32.mrb[10].mxu0 }
 0x101   : > { %v308_v53 = vld [vmem:[#allocation2 + $0x41] sm:$0xff]  ;;  %296 = vst.msk [vmem:[#allocation2 + $0x30] sm:$0xff] %vm200_vm0, %v976_v8  ;;  %v712_v15 = vpop.f32.mrb[11].mxu0  ;;  %v303_v16 = vld [vmem:[#allocation2 + $0x19] sm:$0xff]  ;;  %v461_v18 = vadd.f32 %v429_v9, %v419_v0  ;;  %v347_v24 = vsel %vm343_vm9, %v313_v63, 0.0 }
 0x102   : > { %v330_v60 = vsel %vm322_vm11, %v308_v53, 0.0  ;;  %v372_v61 = vld [vmem:[#allocation2 + $0x42] sm:$0xff]  ;;  %v356_v20 = vadd.f32 %v334_v3, %v312_v57  ;;  %v335_v26 = vadd.f32 %v303_v16, %v943_v34  ;;  %v377_v30 = vld [vmem:[#allocation2 + $0x16] sm:$0xff] }
 0x103   : > { %v310_v1 = vld [vmem:[#allocation2 + $0x51] sm:$0xff]  ;;  %v340_v5 = vadd.f32 %v330_v60, %v277_v31  ;;  %v394_v13 = vsel %vm386_vm12, %v372_v61, 0.0  ;;  %v309_v22 = vld [vmem:[#allocation2 + $0x49] sm:$0xff]  ;;  %v411_v44 = vsel %vm407_vm10, %v377_v30, 0.0  ;;  %v1002_v46 = vadd.f32 %v473_v10, %v461_v18  ;;  %v314_v15 = vld [vmem:[#allocation2 + $0x1f] sm:$0xff] }
 0x104   : > { %v374_v6 = vld [vmem:[#allocation2 + $0x52] sm:$0xff]  ;;  %v332_v12 = vsel %vm322_vm11, %v310_v1, 0.0  ;;  %v319_v23 = vld [vmem:[#allocation2 + $0x47] sm:$0xff]  ;;  %v341_v28 = vadd.f32 %v309_v22, %v945_v35  ;;  %v398_v33 = vadd.f32 %v388_v7, %v356_v20  ;;  %v357_v34 = vadd.f32 %v347_v24, %v335_v26  ;;  %v367_v35 = vld [vmem:[#allocation2 + $0x1a] sm:$0xff] }
 0x105   : > { %v320_v11 = vld [vmem:[#allocation2 + $0x4f] sm:$0xff]  ;;  %v342_v19 = vadd.f32 %v332_v12, %v285_v40  ;;  %v362_v21 = vadd.f32 %v340_v5, %v318_v58  ;;  %v396_v25 = vsel %vm386_vm12, %v374_v6, 0.0  ;;  %v353_v27 = vsel %vm343_vm9, %v319_v23, 0.0  ;;  %v383_v38 = vld [vmem:[#allocation2 + $0x46] sm:$0xff] }
 0x106   : > { %v438_v14 = vld [vmem:[#allocation2 + $0x53] sm:$0xff]  ;;  %v363_v42 = vadd.f32 %v353_v27, %v341_v28  ;;  %v373_v43 = vld [vmem:[#allocation2 + $0x4a] sm:$0xff]  ;;  %v417_v51 = vsel %vm407_vm10, %v383_v38, 0.0  ;;  %v420_v52 = vadd.f32 %v398_v33, %v376_v29  ;;  %v304_v56 = vld [vmem:[#allocation2 + $0x21] sm:$0xff]  ;;  %v399_v58 = vadd.f32 %v367_v35, %v357_v34 }
 0x107   : > { %v364_v31 = vadd.f32 %v342_v19, %v320_v11  ;;  %v384_v32 = vld [vmem:[#allocation2 + $0x4e] sm:$0xff]  ;;  %v460_v36 = vsel %vm450_vm14, %v438_v14, 0.0  ;;  %v404_v40 = vadd.f32 %v394_v13, %v362_v21  ;;  %v436_v45 = vld [vmem:[#allocation2 + $0x43] sm:$0xff]  ;;  %v326_v1 = vsel %vm322_vm11, %v304_v56, 0.0  ;;  %v431_v28 = vld [vmem:[#allocation2 + $0x1b] sm:$0xff] }
 0x108   : > { %v430_v41 = vld [vmem:[#allocation2 + $0x13] sm:$0xff]  ;;  %v315_v48 = vld [vmem:[#allocation2 + $0x27] sm:$0xff]  ;;  %v458_v60 = vsel %vm450_vm14, %v436_v45, 0.0  ;;  %v405_v3 = vadd.f32 %v373_v43, %v363_v42  ;;  %v336_v10 = vadd.f32 %v326_v1, %v952_v39  ;;  %v421_v18 = vadd.f32 %v411_v44, %v399_v58  ;;  %v378_v42 = vld [vmem:[#allocation2 + $0x1e] sm:$0xff] }
 0x109   : > { %v406_v47 = vadd.f32 %v396_v25, %v364_v31  ;;  %v379_v49 = vld [vmem:[#allocation2 + $0x26] sm:$0xff]  ;;  %v452_v53 = vsel %vm450_vm14, %v430_v41, 0.0  ;;  %v349_v54 = vsel %vm343_vm9, %v315_v48, 0.0  ;;  %v426_v59 = vadd.f32 %v404_v40, %v382_v37  ;;  %v306_v63 = vld [vmem:[#allocation2 + $0x31] sm:$0xff]  ;;  %v371_v34 = vld [vmem:[#allocation2 + $0x3a] sm:$0xff] }
 0x10a   : > { %v443_v50 = vld [vmem:[#allocation2 + $0x25] sm:$0xff]  ;;  %v413_v0 = vsel %vm407_vm10, %v379_v49, 0.0  ;;  %v328_v5 = vsel %vm322_vm11, %v306_v63, 0.0  ;;  %v370_v7 = vld [vmem:[#allocation2 + $0x32] sm:$0xff]  ;;  %v358_v39 = vadd.f32 %v336_v10, %v314_v15  ;;  %v427_v23 = vadd.f32 %v417_v51, %v405_v3  ;;  %v435_v3 = vld [vmem:[#allocation2 + $0x3b] sm:$0xff] }
 0x10b   : > { %v368_v57 = vld [vmem:[#allocation2 + $0x22] sm:$0xff]  ;;  %v428_v61 = vadd.f32 %v406_v47, %v384_v32  ;;  %v1021_v9 = vsel %vm471_vm13, %v443_v50, 0.0  ;;  %v338_v13 = vadd.f32 %v328_v5, %v976_v8  ;;  %v434_v14 = vld [vmem:[#allocation2 + $0x33] sm:$0xff]  ;;  %v392_v20 = vsel %vm386_vm12, %v370_v7, 0.0  ;;  %v369_v25 = vld [vmem:[#allocation2 + $0x2a] sm:$0xff] }
 0x10c   : > { %v305_v62 = vld [vmem:[#allocation2 + $0x29] sm:$0xff]  ;;  %v390_v16 = vsel %vm386_vm12, %v368_v57, 0.0  ;;  %v1031_v21 = vld [vmem:[#allocation2 + $0x34] sm:$0xff]  ;;  %v456_v8 = vsel %vm450_vm14, %v434_v14, 0.0  ;;  %v462_v38 = vadd.f32 %v452_v53, %v420_v52  ;;  %v463_v35 = vadd.f32 %v431_v28, %v421_v18  ;;  %v442_v5 = vld [vmem:[#allocation2 + $0x1d] sm:$0xff] }
 0x10d   : > { %v337_v6 = vadd.f32 %v305_v62, %v964_v55  ;;  %v432_v11 = vld [vmem:[#allocation2 + $0x23] sm:$0xff]  ;;  %v1024_v12 = vadd.f32 %v460_v36, %v428_v61  ;;  %v316_v19 = vld [vmem:[#allocation2 + $0x2f] sm:$0xff]  ;;  %v317_v22 = vld [vmem:[#allocation2 + $0x37] sm:$0xff]  ;;  %v400_v33 = vadd.f32 %v390_v16, %v358_v39  ;;  %v511_v41 = vsel %vm505_vm15, %v1031_v21, 0.0 }
 0x10e   : > { %v360_v24 = vadd.f32 %v338_v13, %v316_v19  ;;  %v351_v26 = vsel %vm343_vm9, %v317_v22, 0.0  ;;  %v437_v27 = vld [vmem:[#allocation2 + $0x4b] sm:$0xff]  ;;  %v454_v29 = vsel %vm450_vm14, %v432_v11, 0.0  ;;  %v381_v32 = vld [vmem:[#allocation2 + $0x36] sm:$0xff]  ;;  %v468_v43 = vadd.f32 %v458_v60, %v426_v59 }
 0x10f   : > { %v359_v55 = vadd.f32 %v349_v54, %v337_v6  ;;  %v361_v31 = vadd.f32 %v351_v26, %v987_v17  ;;  %v441_v36 = vld [vmem:[#allocation2 + $0x15] sm:$0xff]  ;;  %v422_v48 = vadd.f32 %v400_v33, %v378_v42  ;;  %v447_v49 = vld [vmem:[#allocation2 + $0x45] sm:$0xff]  ;;  %v469_v17 = vadd.f32 %v437_v27, %v427_v23  ;;  %v440_v53 = vld [vmem:[#allocation2 + $0xd] sm:$0xff] }
 0x110   : > { %v445_v37 = vld [vmem:[#allocation2 + $0x35] sm:$0xff]  ;;  %v402_v40 = vadd.f32 %v392_v20, %v360_v24  ;;  %v433_v51 = vld [vmem:[#allocation2 + $0x2b] sm:$0xff]  ;;  %v415_v52 = vsel %vm407_vm10, %v381_v32, 0.0  ;;  %v446_v54 = vld [vmem:[#allocation2 + $0x3d] sm:$0xff]  ;;  %v475_v56 = vsel %vm471_vm13, %v441_v36, 0.0  ;;  %v484_v62 = vadd.f32 %v462_v38, %v440_v53 }
 0x111   : > { %v401_v30 = vadd.f32 %v369_v25, %v359_v55  ;;  %v380_v44 = vld [vmem:[#allocation2 + $0x2e] sm:$0xff]  ;;  %v403_v47 = vadd.f32 %v371_v34, %v361_v31  ;;  %v479_v57 = vsel %vm471_vm13, %v445_v37, 0.0  ;;  %v464_v61 = vadd.f32 %v454_v29, %v422_v48  ;;  %v500_v11 = vld [vmem:[#allocation2 + $0x44] sm:$0xff]  ;;  %v495_v26 = vld [vmem:[#allocation2 + $0x1c] sm:$0xff] }
 0x112   : > { %v424_v50 = vadd.f32 %v402_v40, %v380_v44  ;;  %v448_v60 = vld [vmem:[#allocation2 + $0x4d] sm:$0xff]  ;;  %v481_v6 = vsel %vm471_vm13, %v447_v49, 0.0  ;;  %v485_v7 = vadd.f32 %v475_v56, %v463_v35  ;;  %v490_v10 = vadd.f32 %v468_v43, %v446_v54  ;;  %v503_v39 = vld [vmem:[#allocation2 + $0x4] sm:$0xff] }
 0x113   : > { %v423_v45 = vadd.f32 %v413_v0, %v401_v30  ;;  %v425_v59 = vadd.f32 %v415_v52, %v403_v47  ;;  %v494_v63 = vld [vmem:[#allocation2 + $0x14] sm:$0xff]  ;;  %v496_v0 = vld [vmem:[#allocation2 + $0x24] sm:$0xff]  ;;  %v486_v16 = vadd.f32 %v464_v61, %v442_v5  ;;  %v491_v18 = vadd.f32 %v481_v6, %v469_v17  ;;  %v493_v20 = vld [vmem:[#allocation2 + $0xc] sm:$0xff] }
 0x114   : > { %v466_v1 = vadd.f32 %v456_v8, %v424_v50  ;;  %v444_v13 = vld [vmem:[#allocation2 + $0x2d] sm:$0xff]  ;;  %v492_v55 = vadd.f32 %v1024_v12, %v448_v60  ;;  %v507_v23 = vsel %vm505_vm15, %v494_v63, 0.0  ;;  %v509_v24 = vsel %vm505_vm15, %v496_v0, 0.0  ;;  %v499_v30 = vld [vmem:[#allocation2 + $0x3c] sm:$0xff] }
 0x115   : > { %v465_v58 = vadd.f32 %v433_v51, %v423_v45  ;;  %v467_v15 = vadd.f32 %v435_v3, %v425_v59  ;;  %v502_v22 = vld [vmem:[#allocation2 + $0x54] sm:$0xff]  ;;  %v497_v25 = vld [vmem:[#allocation2 + $0x2c] sm:$0xff]  ;;  %v516_v28 = vadd.f32 %v493_v20, %v1002_v46  ;;  %v517_v27 = vadd.f32 %v507_v23, %v484_v62 }
 0x116   : > { %v488_v19 = vadd.f32 %v466_v1, %v444_v13  ;;  %v518_v31 = vadd.f32 %v495_v26, %v485_v7  ;;  %v519_v32 = vadd.f32 %v509_v24, %v486_v16  ;;  %v501_v33 = vld [vmem:[#allocation2 + $0x4c] sm:$0xff]  ;;  %v515_v36 = vsel %vm505_vm15, %v502_v22, 0.0 }
 0x117   : > { %v487_v14 = vadd.f32 %v1021_v9, %v465_v58  ;;  %v489_v8 = vadd.f32 %v479_v57, %v467_v15  ;;  %v513_v9 = vsel %vm505_vm15, %v500_v11, 0.0  ;;  %v528_v40 = vsel %vm526_vm1, %v503_v39, 0.0 }
 0x118   : > { %v521_v12 = vadd.f32 %v511_v41, %v488_v19  ;;  %v523_v38 = vadd.f32 %v513_v9, %v490_v10  ;;  %v524_v34 = vadd.f32 %v501_v33, %v491_v18  ;;  %v525_v42 = vadd.f32 %v515_v36, %v492_v55 }
 0x119   : > { %v520_v29 = vadd.f32 %v497_v25, %v487_v14  ;;  %v522_v37 = vadd.f32 %v499_v30, %v489_v8  ;;  %v530_v46 = vsel %vm526_vm1, %v494_v63, 0.0  ;;  %v532_v41 = vsel %vm526_vm1, %v496_v0, 0.0 }
 0x11a   : > { %v538_v35 = vadd.f32 %v528_v40, %v516_v28  ;;  %v539_v43 = vadd.f32 %v517_v27, %v493_v20  ;;  %v540_v44 = vadd.f32 %v530_v46, %v518_v31  ;;  %v541_v45 = vadd.f32 %v519_v32, %v495_v26 }
 0x11b   : > { %v543_v47 = vadd.f32 %v521_v12, %v497_v25  ;;  %v534_v4 = vsel %vm526_vm1, %v1031_v21, 0.0  ;;  %v536_v48 = vsel %vm526_vm1, %v500_v11, 0.0  ;;  %v542_v49 = vadd.f32 %v532_v41, %v520_v29 }
 0x11c   : > { %v544_v17 = vadd.f32 %v534_v4, %v522_v37  ;;  %v548_v50 = vmul.f32 0.012345679, %v538_v35  ;;  %v549_v51 = vmul.f32 0.012345679, %v539_v43  ;;  %v550_v52 = vmul.f32 0.012345679, %v540_v44 }
 0x11d   : > { %v546_v53 = vadd.f32 %v536_v48, %v524_v34  ;;  %v551_v54 = vmul.f32 0.012345679, %v541_v45  ;;  %v545_v60 = vadd.f32 %v523_v38, %v499_v30  ;;  %v547_v61 = vadd.f32 %v525_v42, %v501_v33 }
 0x11e   : > { %v552_v56 = vmul.f32 %v548_v50, %v538_v35  ;;  %v553_v57 = vmul.f32 %v549_v51, %v539_v43  ;;  %v556_v58 = vmul.f32 %v550_v52, %v540_v44  ;;  %v560_v59 = vmul.f32 %v550_v52, %v538_v35 }
 0x11f   : > { %v557_v62 = vmul.f32 %v551_v54, %v541_v45  ;;  %v561_v63 = vmul.f32 %v551_v54, %v539_v43 }
 0x120   : > { %v554_v0 = vsub.f32 %v542_v49, %v552_v56  ;;  %v555_v21 = vsub.f32 %v543_v47, %v553_v57  ;;  %v558_v1 = vsub.f32 %v544_v17, %v556_v58  ;;  %v562_v2 = vsub.f32 %v546_v53, %v560_v59 }
 0x121   : > { %v559_v3 = vsub.f32 %v545_v60, %v557_v62  ;;  %v563_v5 = vsub.f32 %v547_v61, %v561_v63 }
 0x122   : > { %v566_v6 = vmul.f32 %v558_v1, %v554_v0  ;;  %v564_v13 = vmul.f32 %v562_v2, %v562_v2 }
 0x123   : > { %v567_v7 = vmul.f32 %v559_v3, %v555_v21  ;;  %v565_v15 = vmul.f32 %v563_v5, %v563_v5 }
 0x124   : > { %v568_v10 = vadd.f32 1e-05, %v566_v6 }
 0x125   : > { %v569_v11 = vadd.f32 1e-05, %v567_v7 }
 0x126   : > { %767 = vrcp.f32 %v568_v10 }
 0x127   : > { %769 = vrcp.f32 %v569_v11 }
 0x130   : > { %v768_v14 = vpop.eup %767 }
 0x131   : > { %v770_v16 = vpop.eup %769  ;;  %v572_v18 = vmul.f32 %v768_v14, %v564_v13 }
 0x132   : > { %v573_v19 = vmul.f32 %v770_v16, %v565_v15 }
 0x133   : > { %v574_v55 = vsel %vm200_vm0, %v572_v18, 0.0 }
 0x134   : > { %v575_v20 = vsel %vm200_vm0, %v573_v19, 0.0 }
 0x135   : > { %v576_v22 = vadd.f32 %v575_v20, %v574_v55 }
 0x137   : > { %577 = vadd.xlane.f32.xlu0 %v576_v22 }
 0x1c4   : > { %v578_v39 = vpop.xlane.xlu0 %577 }
 0x1c5   : > { %v579_v23 = vrot.slane %v578_v39, 4 }
 0x1c7   : > { %v580_v24 = vadd.f32 %v579_v23, %v578_v39 }
 0x1c9   : > { %v581_v25 = vrot.slane %v580_v24, 2 }
 0x1cb   : > { %v582_v8 = vadd.f32 %v581_v25, %v580_v24 }
 0x1cd   : > { %v583_v26 = vrot.slane %v582_v8, 1 }
 0x1cf   : > { %v584_v9 = vadd.f32 %v583_v26, %v582_v8 }
 0x1d1   : > { %723 = vpush %v584_v9 }
 0x202   : > { %s724_s6 = spop %723 }
 0x203   : > { %v586_v28 = vstv %s724_s6 }
 0x204   : > { %587 = vst [vmem:[%s153_s3] sm:$0xff] %v586_v28 }
 0x205   : > { %784 = shalt.err (!%p781_p3)
}
 0x206   : > { %s785_s23 = scalar_lea.hbm %s1083_s14, 128  ;;  %s789_s26 = scalar_lea.hbm %s1125_s2, 256 }
 0x207   : > { %p786_p4 = scmp.ne.s32.totalorder %s1083_s14, %s785_s23  ;;  %p790_p9 = scmp.lt.u32.totalorder %s1083_s14, %s1125_s2 }
 0x208   : > { %p791_p10 = scmp.lt.u32.totalorder %s789_s26, %s785_s23  ;;  %p793_p12 = scmp.lt.u32.totalorder %s785_s23, %s1083_s14 }
 0x209   : > { %p787_p7 = pnand %p786_p4, %p892_p5 }
 0x20a   : > { %p792_p11 = por %p791_p10, %p790_p9 }
 0x20b   : > { %p788_p8 = pneg %p787_p7 }
 0x20c   : > { %p794_p13 = por %p793_p12, %p792_p11 }
 0x20e   : > { %p795_p0 = pnand %p794_p13, %p788_p8 }
 0x210   : > { %798 = shalt.err (!%p795_p0)
}
 0x211   : > { %725 = dma.vmem_to_hbm [thread:$0]  (%p892_p5), %s1078_s4, 128, %s1083_s14, %s589_s16  }
 0x212 PF: > { %p731_p1 = scmp.ge.s32.totalorder %s833_s12, 2  ;;  %s614_s29 = sand.u32 1, %s821_s9  }
 0x213   : > { %s615_s30 = scalar_lea.sflag [#allocation4], %s614_s29 }
 0x214   : > { %p728_p2 = pnand %p731_p1, %p896_p6 }
 0x216   : > { %816 = dma.done.wait (!%p728_p2), %s615_s30, 128  }
 0x217   : > { %818 = vsyncadd (!%p728_p2), %s615_s30, 4294967168  ;;  %p12_p3 = scmp.ge.s32.totalorder %s879_s15, 4   ;;  %s1130_s9 = smov %s825_s10 }
 0x218   : > { %s1131_s10 = smov %s829_s11  ;;  %s1132_s11 = smov %s890_s18 }
 0x219   : > { %s1133_s12 = smov %s879_s15  ;;  %14 = sbr.rel (!%p12_p3) target bundleno = 3 (0x3), region = 66 }
 0x220   :  { %620 = vsyncpa [#allocation4], 1 }
 0x221   :  { %622 = vsyncpa [#allocation4 + $0x1], 1 }

</bundles_post_ra>
